<compile_context>
chip_gen: v6e
topology: v6e:2x2x1
jax: 0.10.0
libtpu: 0.0.40
codegen_flags: <defaults>
</compile_context>

<pallas_src>
import functools

import jax
import jax.numpy as jnp
from jax.experimental import pallas as pl
from jax.experimental.pallas import tpu as pltpu

D = 200      # fixed intermediate width of the module
DP = 256     # D zero-padded up to a multiple of 128 lanes
LANE = 128


def _round_up(x, m):
    return (x + m - 1) // m * m


def _vmem_limit_bytes():
    """Per-generation VMEM budget: ~3/4 of physical, capped at 100 MiB
    (=> ~48 MiB on v7x, ~96 MiB on v5e/v6e)."""
    try:
        cap = pltpu.get_tpu_info().vmem_capacity_bytes
    except Exception:
        cap = 128 * 1024 * 1024
    return max(32 * 1024 * 1024, min(cap * 3 // 4, 100 * 1024 * 1024))


def _pick_label_group(label_num, seq_len, vmem_limit, max_unroll=8):
    """Largest divisor of label_num such that the double-buffered
    (1, Lg, S, S) f32 result block stays within ~1/3 of the VMEM budget and
    the static in-kernel label unroll stays short."""
    res_budget = vmem_limit // 3
    by_vmem = max(1, res_budget // (2 * seq_len * seq_len * 4))
    lg = int(min(label_num, max_unroll, by_vmem))
    while label_num % lg:
        lg -= 1
    return lg


# ----------------------------------------------------------------------------
# Pass 1: per-batch projections  head = l3(relu(l1(x))), tail_t = l4(relu(l2(x))).T
# ----------------------------------------------------------------------------
def _projection_kernel(seq_ref, w12_ref, b12_ref, w3_ref, b3_ref,
                       w4_ref, b4_ref, head_ref, tailt_ref, *, dp):
    x = seq_ref[0]                                                   # (S, Hp)
    # Fused first projection for head and tail branches: one MXU push.
    h12 = jnp.maximum(
        jnp.dot(x, w12_ref[...], preferred_element_type=jnp.float32)
        + b12_ref[...], 0.0)                                         # (S, 2*dp) f32
    h12 = h12.astype(w3_ref.dtype)
    head = (jnp.dot(h12[:, :dp], w3_ref[...],
                    preferred_element_type=jnp.float32) + b3_ref[...])
    tail = (jnp.dot(h12[:, dp:], w4_ref[...],
                    preferred_element_type=jnp.float32) + b4_ref[...])
    head_ref[0] = head.astype(head_ref.dtype)
    # One XLU transpose per batch, reused by every (batch, label-group) step.
    tailt_ref[0] = tail.T.astype(tailt_ref.dtype)


# ----------------------------------------------------------------------------
# Pass 2: per-(batch, label-group) biaffine scores + per-label logsumexp.
# ----------------------------------------------------------------------------
def _pairwise_kernel(head_ref, tailt_ref, ep_ref, wbi_ref,
                     lse_ref, res_ref, affine_scr, *, lg, dp):
    head = head_ref[0]                                               # (S, DP)
    tail_t = tailt_ref[0]                                            # (DP, S)
    ep = ep_ref[0]                                                   # (S, S) f32

    # One wide matmul for all labels of this group, staged into a VMEM
    # scratch ref so per-label slices are cheap 256-aligned ref reads instead
    # of a large live value (bounds vreg pressure / spills).
    affine_scr[...] = jnp.dot(
        head, wbi_ref[...],
        preferred_element_type=jnp.float32).astype(affine_scr.dtype)

    m_parts, s_parts = [], []
    for l in range(lg):                 # lg <= 8 and static -> bounded unroll
        bi = jnp.dot(affine_scr[:, l * dp:(l + 1) * dp], tail_t,
                     preferred_element_type=jnp.float32)             # (S, S) f32
        res = bi + ep                                                # f32 elementwise
        res_ref[0, l] = res
        m = jnp.max(res, keepdims=True)                              # (1, 1)
        m_parts.append(m)
        s_parts.append(jnp.sum(jnp.exp(res - m), keepdims=True))     # (1, 1)

    # Single combine + single log for the whole group.
    m_cat = jnp.concatenate(m_parts, axis=1)                         # (1, lg)
    s_cat = jnp.concatenate(s_parts, axis=1)                         # (1, lg)
    lse_ref[...] = (m_cat + jnp.log(s_cat))[None, None]              # (1,1,1,lg)


# ----------------------------------------------------------------------------
# Wrapper
# ----------------------------------------------------------------------------
def biaffine_pairwise_score(seq, ep_dist, params, label_num,
                            matmul_dtype=jnp.bfloat16,
                            result_layout="blss"):
    """params = (w1, b1, w2, b2, w3, b3, w4, b4, w_bi), weights stored (in, out).

    Returns (output (B, L), result):
      result_layout="blss" (default): result is (B, L, S, S) -- lane-dense
        kernel layout (same values as PyTorch, different memory layout).
      result_layout="bssl": result is (B, S, S, L) -- exact PyTorch layout
        (costs an extra HBM pass over the full tensor).
    """
    B, S, H = seq.shape
    L = label_num
    w1, b1, w2, b2, w3, b3, w4, b4, w_bi = params

    mm = matmul_dtype
    pad_d = DP - D
    Hp = _round_up(H, LANE)

    def pad_cols(a):
        return jnp.pad(a, ((0, 0), (0, pad_d)))

    # Fused + padded first-layer weights: [w1 | w2] -> (Hp, 2*DP).
    w12 = jnp.concatenate([pad_cols(w1), pad_cols(w2)], axis=1)
    w12 = jnp.pad(w12, ((0, Hp - H), (0, 0))).astype(mm)              # (Hp, 2*DP)
    b12 = jnp.concatenate([pad_cols(b1), pad_cols(b2)], axis=1)       # f32 (1, 2*DP)

    w3p = jnp.pad(w3, ((0, pad_d), (0, pad_d))).astype(mm)            # (DP, DP)
    w4p = jnp.pad(w4, ((0, pad_d), (0, pad_d))).astype(mm)            # (DP, DP)
    b3p = pad_cols(b3)                                                # f32 (1, DP)
    b4p = pad_cols(b4)                                                # f32 (1, DP)

    # (200, L*200) -> (200, L, 200) -> zero-pad feature dims -> (DP, L*DP)
    # so that wbi2d[d, l*DP + e] == w_bi[d, l*200 + e] for d,e < 200 else 0.
    wbi2d = jnp.pad(w_bi.reshape(D, L, D),
                    ((0, pad_d), (0, 0), (0, pad_d))).reshape(DP, L * DP).astype(mm)

    seq_p = jnp.pad(seq, ((0, 0), (0, 0), (0, Hp - H))).astype(mm)    # (B, S, Hp)
    ep_dist = ep_dist.astype(jnp.float32)

    vmem_limit = _vmem_limit_bytes()

    def cparams(sems):
        return pltpu.CompilerParams(dimension_semantics=sems,
                                    vmem_limit_bytes=vmem_limit)

    # ---- pass 1: head / tail_t per batch (tiny intermediates, bf16) --------
    proj = functools.partial(_projection_kernel, dp=DP)
    head, tail_t = pl.pallas_call(
        proj,
        out_shape=(jax.ShapeDtypeStruct((B, S, DP), mm),
                   jax.ShapeDtypeStruct((B, DP, S), mm)),
        grid_spec=pltpu.PrefetchScalarGridSpec(
            num_scalar_prefetch=0,
            grid=(B,),
            in_specs=[
                pl.BlockSpec((1, S, Hp), lambda b: (b, 0, 0)),        # seq
                # Constant weight blocks; pipeline_mode=pl.Buffered(1) would
                # halve their VMEM residency but they are small here.
                pl.BlockSpec((Hp, 2 * DP), lambda b: (0, 0)),         # fused w1|w2
                pl.BlockSpec((1, 2 * DP), lambda b: (0, 0)),          # fused b1|b2
                pl.BlockSpec((DP, DP), lambda b: (0, 0)),             # w3
                pl.BlockSpec((1, DP), lambda b: (0, 0)),              # b3
                pl.BlockSpec((DP, DP), lambda b: (0, 0)),             # w4
                pl.BlockSpec((1, DP), lambda b: (0, 0)),              # b4
            ],
            out_specs=(pl.BlockSpec((1, S, DP), lambda b: (b, 0, 0)),
                       pl.BlockSpec((1, DP, S), lambda b: (b, 0, 0))),
        ),
        compiler_params=cparams(("parallel",)),
    )(seq_p, w12, b12, w3p, b3p, w4p, b4p)

    # ---- pass 2: biaffine scores + logsumexp over (batch, label-group) -----
    LG = _pick_label_group(L, S, vmem_limit)
    G = L // LG

    pair = functools.partial(_pairwise_kernel, lg=LG, dp=DP)
    lse4, res_lss = pl.pallas_call(
        pair,
        out_shape=(jax.ShapeDtypeStruct((B, G, 1, LG), jnp.float32),
                   jax.ShapeDtypeStruct((B, L, S, S), jnp.float32)),
        grid_spec=pltpu.PrefetchScalarGridSpec(
            num_scalar_prefetch=0,
            grid=(B, G),                                   # g is inner -> head/tail/ep stay resident
            in_specs=[
                pl.BlockSpec((1, S, DP), lambda b, g: (b, 0, 0)),     # head
                pl.BlockSpec((1, DP, S), lambda b, g: (b, 0, 0)),     # tail_t
                pl.BlockSpec((1, S, S), lambda b, g: (b, 0, 0)),      # ep_dist
                pl.BlockSpec((DP, LG * DP), lambda b, g: (0, g)),     # biaffine weight (group slab)
            ],
            out_specs=(
                pl.BlockSpec((1, 1, 1, LG), lambda b, g: (b, g, 0, 0)),   # logsumexp
                pl.BlockSpec((1, LG, S, S), lambda b, g: (b, g, 0, 0)),   # pairwise scores
            ),
            scratch_shapes=[pltpu.VMEM((S, LG * DP), mm)],            # staged affine
        ),
        compiler_params=cparams(("parallel", "parallel")),
    )(head, tail_t, ep_dist, wbi2d)

    output = lse4.reshape(B, L)                     # group-major == label order
    if result_layout == "bssl":
        # Exact PyTorch layout; re-streams the full result tensor through HBM.
        result = jnp.transpose(res_lss, (0, 2, 3, 1))
    else:
        result = res_lss                            # lane-dense (B, L, S, S)
    return output, result


# ----------------------------------------------------------------------------
# Deterministic synthetic parameters + pure-JAX reference
# ----------------------------------------------------------------------------
def _init_params(key, hidden_size, label_num):
    """Linear weights stored as (in, out)."""
    ks = jax.random.split(key, 9)

    def lin(k, fan_in, fan_out):
        kw, kb = jax.random.split(k)
        w = jax.random.normal(kw, (fan_in, fan_out), jnp.float32) * jnp.sqrt(2.0 / fan_in)
        b = jax.random.normal(kb, (1, fan_out), jnp.float32) * 0.01
        return w, b

    w1, b1 = lin(ks[0], hidden_size, D)
    w2, b2 = lin(ks[1], hidden_size, D)
    w3, b3 = lin(ks[2], D, D)
    w4, b4 = lin(ks[3], D, D)
    # kaiming_normal_ on (200, L*200): std = sqrt(2 / fan_in), fan_in = L*200
    w_bi = jax.random.normal(ks[4], (D, label_num * D), jnp.float32) * jnp.sqrt(
        2.0 / (label_num * D))
    return (w1, b1, w2, b2, w3, b3, w4, b4, w_bi)


def _reference(seq, ep_dist, params, label_num):
    """Pure-JAX f32 reference mirroring the PyTorch forward exactly."""
    w1, b1, w2, b2, w3, b3, w4, b4, w_bi = params
    B, S, H = seq.shape
    head = jnp.maximum(seq @ w1 + b1, 0.0) @ w3 + b3                 # (B, S, 200)
    tail = jnp.maximum(seq @ w2 + b2, 0.0) @ w4 + b4                 # (B, S, 200)
    tail_t = jnp.transpose(tail, (0, 2, 1))                          # (B, 200, S)
    affine = head @ w_bi                                             # (B, S, L*200)
    bi = jnp.matmul(affine.reshape(B, S * label_num, D), tail_t)     # (B, S*L, S)
    bi = bi.reshape(B, S, label_num, S)
    bi = jnp.transpose(bi, (0, 1, 3, 2))                             # (B, S, S, L)
    result = bi + ep_dist[..., None]
    output = jax.nn.logsumexp(result, axis=(1, 2))
    return output, result


if __name__ == "__main__":
    B, S, H, L = 2, 8, 32, 4

    key = jax.random.PRNGKey(0)
    k_seq, k_ep, k_par = jax.random.split(key, 3)
    seq = jax.random.normal(k_seq, (B, S, H), jnp.float32)
    ep_dist = jax.random.normal(k_ep, (B, S, S), jnp.float32)
    params = _init_params(k_par, H, L)

    ref_out, ref_res = _reference(seq, ep_dist, params, L)           # (B,L), (B,S,S,L)
    ref_res_lss = jnp.transpose(ref_res, (0, 3, 1, 2))               # (B,L,S,S)

    # Exact path (f32 matmuls): tight structural + numerical check.
    out32, res32 = biaffine_pairwise_score(seq, ep_dist, params, L,
                                           matmul_dtype=jnp.float32)
    jax.block_until_ready((out32, res32))
    assert out32.shape == (B, L) and res32.shape == (B, L, S, S)
    assert jnp.allclose(res32, ref_res_lss, rtol=1e-3, atol=1e-2)
    assert jnp.allclose(out32, ref_out, rtol=1e-3, atol=1e-2)

    # Default fast path (bf16 MXU operands, f32 accumulation / elementwise).
    # Looser tolerance: three chained bf16 matmuls on O(10) values.
    out, res = biaffine_pairwise_score(seq, ep_dist, params, L)
    jax.block_until_ready((out, res))
    assert out.shape == (B, L) and res.shape == (B, L, S, S)
    assert jnp.allclose(res, ref_res_lss, rtol=1e-1, atol=1.0)
    assert jnp.allclose(out, ref_out, rtol=1e-1, atol=1.0)

    print("KERNEL_OK")
</pallas_src>

<mosaic_0001>
module attributes {stable_mosaic.version = 11 : i64} {
  func.func @_projection_kernel(%arg0: i32, %arg1: memref<1x8x128xf32, #tpu.memory_space<vmem>>, %arg2: memref<128x512xf32, #tpu.memory_space<vmem>>, %arg3: memref<1x512xf32, #tpu.memory_space<vmem>>, %arg4: memref<256x256xf32, #tpu.memory_space<vmem>>, %arg5: memref<1x256xf32, #tpu.memory_space<vmem>>, %arg6: memref<256x256xf32, #tpu.memory_space<vmem>>, %arg7: memref<1x256xf32, #tpu.memory_space<vmem>>, %arg8: memref<1x8x256xf32, #tpu.memory_space<vmem>>, %arg9: memref<1x256x8xf32, #tpu.memory_space<vmem>>) attributes {dimension_semantics = [#tpu.dimension_semantics<parallel>], iteration_bounds = array<i64: 2>, scalar_prefetch = 0 : i64, scratch_operands = 0 : i64, tpu.core_type = #tpu.core_type<tc>, window_params = [{transform_indices = @transform_0, window_bounds = array<i64: 1, 8, 128>}, {pipeline_mode = #tpu.pipeline_mode<synchronous>, transform_indices = @transform_1, window_bounds = array<i64: 128, 512>}, {pipeline_mode = #tpu.pipeline_mode<synchronous>, transform_indices = @transform_2, window_bounds = array<i64: 1, 512>}, {pipeline_mode = #tpu.pipeline_mode<synchronous>, transform_indices = @transform_3, window_bounds = array<i64: 256, 256>}, {pipeline_mode = #tpu.pipeline_mode<synchronous>, transform_indices = @transform_4, window_bounds = array<i64: 1, 256>}, {pipeline_mode = #tpu.pipeline_mode<synchronous>, transform_indices = @transform_5, window_bounds = array<i64: 256, 256>}, {pipeline_mode = #tpu.pipeline_mode<synchronous>, transform_indices = @transform_6, window_bounds = array<i64: 1, 256>}, {transform_indices = @transform_7, window_bounds = array<i64: 1, 8, 256>}, {transform_indices = @transform_8, window_bounds = array<i64: 1, 256, 8>}]} {
    %c0 = arith.constant 0 : index
    %c0_0 = arith.constant 0 : index
    %c0_1 = arith.constant 0 : index
    %0 = vector.load %arg1[%c0, %c0_0, %c0_1] : memref<1x8x128xf32, #tpu.memory_space<vmem>>, vector<1x8x128xf32>
    %1 = vector.shape_cast %0 : vector<1x8x128xf32> to vector<8x128xf32>
    %c0_2 = arith.constant 0 : index
    %c0_3 = arith.constant 0 : index
    %2 = vector.load %arg2[%c0_2, %c0_3] : memref<128x512xf32, #tpu.memory_space<vmem>>, vector<128x512xf32>
    %cst = arith.constant dense<0.000000e+00> : vector<8x512xf32>
    %3 = tpu.matmul %1, %2, %cst {dimension_numbers = #tpu.dot_dimension_numbers<[1], [0], [0], [1], [0, 0, 1, 1], [], []>} : vector<8x128xf32>, vector<128x512xf32>, vector<8x512xf32> -> vector<8x512xf32>
    %c0_4 = arith.constant 0 : index
    %c0_5 = arith.constant 0 : index
    %4 = vector.load %arg3[%c0_4, %c0_5] : memref<1x512xf32, #tpu.memory_space<vmem>>, vector<1x512xf32>
    %5 = vector.broadcast %4 : vector<1x512xf32> to vector<8x512xf32>
    %6 = arith.addf %3, %5 : vector<8x512xf32>
    %cst_6 = arith.constant 0.000000e+00 : f32
    %7 = vector.broadcast %cst_6 : f32 to vector<8x512xf32>
    %8 = arith.maximumf %6, %7 : vector<8x512xf32>
    %9 = vector.extract_strided_slice %8 {offsets = [0, 0], sizes = [8, 256], strides = [1, 1]} : vector<8x512xf32> to vector<8x256xf32>
    %c0_7 = arith.constant 0 : index
    %c0_8 = arith.constant 0 : index
    %10 = vector.load %arg4[%c0_7, %c0_8] : memref<256x256xf32, #tpu.memory_space<vmem>>, vector<256x256xf32>
    %cst_9 = arith.constant dense<0.000000e+00> : vector<8x256xf32>
    %11 = tpu.matmul %9, %10, %cst_9 {dimension_numbers = #tpu.dot_dimension_numbers<[1], [0], [0], [1], [0, 0, 1, 1], [], []>} : vector<8x256xf32>, vector<256x256xf32>, vector<8x256xf32> -> vector<8x256xf32>
    %c0_10 = arith.constant 0 : index
    %c0_11 = arith.constant 0 : index
    %12 = vector.load %arg5[%c0_10, %c0_11] : memref<1x256xf32, #tpu.memory_space<vmem>>, vector<1x256xf32>
    %13 = vector.broadcast %12 : vector<1x256xf32> to vector<8x256xf32>
    %14 = arith.addf %11, %13 : vector<8x256xf32>
    %15 = vector.extract_strided_slice %8 {offsets = [0, 256], sizes = [8, 256], strides = [1, 1]} : vector<8x512xf32> to vector<8x256xf32>
    %c0_12 = arith.constant 0 : index
    %c0_13 = arith.constant 0 : index
    %16 = vector.load %arg6[%c0_12, %c0_13] : memref<256x256xf32, #tpu.memory_space<vmem>>, vector<256x256xf32>
    %cst_14 = arith.constant dense<0.000000e+00> : vector<8x256xf32>
    %17 = tpu.matmul %15, %16, %cst_14 {dimension_numbers = #tpu.dot_dimension_numbers<[1], [0], [0], [1], [0, 0, 1, 1], [], []>} : vector<8x256xf32>, vector<256x256xf32>, vector<8x256xf32> -> vector<8x256xf32>
    %c0_15 = arith.constant 0 : index
    %c0_16 = arith.constant 0 : index
    %18 = vector.load %arg7[%c0_15, %c0_16] : memref<1x256xf32, #tpu.memory_space<vmem>>, vector<1x256xf32>
    %19 = vector.broadcast %18 : vector<1x256xf32> to vector<8x256xf32>
    %20 = arith.addf %17, %19 : vector<8x256xf32>
    %c0_17 = arith.constant 0 : index
    %c0_18 = arith.constant 0 : index
    %c0_19 = arith.constant 0 : index
    %21 = vector.load %arg8[%c0_17, %c0_18, %c0_19] : memref<1x8x256xf32, #tpu.memory_space<vmem>>, vector<1x8x256xf32>
    %22 = vector.shape_cast %21 : vector<1x8x256xf32> to vector<8x256xf32>
    %23 = vector.shape_cast %14 : vector<8x256xf32> to vector<1x8x256xf32>
    tpu.vector_store %arg8[%c0_17, %c0_18, %c0_19], %23 {strides = array<i32>} : memref<1x8x256xf32, #tpu.memory_space<vmem>>, vector<1x8x256xf32>,
    %24 = tpu.transpose %20, [1, 0] : vector<8x256xf32> -> vector<256x8xf32>
    %c0_20 = arith.constant 0 : index
    %c0_21 = arith.constant 0 : index
    %c0_22 = arith.constant 0 : index
    %25 = vector.load %arg9[%c0_20, %c0_21, %c0_22] : memref<1x256x8xf32, #tpu.memory_space<vmem>>, vector<1x256x8xf32>
    %26 = vector.shape_cast %25 : vector<1x256x8xf32> to vector<256x8xf32>
    %27 = vector.shape_cast %24 : vector<256x8xf32> to vector<1x256x8xf32>
    tpu.vector_store %arg9[%c0_20, %c0_21, %c0_22], %27 {strides = array<i32>} : memref<1x256x8xf32, #tpu.memory_space<vmem>>, vector<1x256x8xf32>,
    return
  }
  func.func @transform_0(%arg0: i32) -> (i32, i32, i32) {
    %c0_i32 = arith.constant 0 : i32
    %c0_i32_0 = arith.constant 0 : i32
    %c0_i32_1 = arith.constant 0 : i32
    return %arg0, %c0_i32, %c0_i32_0 : i32, i32, i32
  }
  func.func @transform_1(%arg0: i32) -> (i32, i32) {
    %c0_i32 = arith.constant 0 : i32
    %c0_i32_0 = arith.constant 0 : i32
    %c0_i32_1 = arith.constant 0 : i32
    return %c0_i32, %c0_i32_0 : i32, i32
  }
  func.func @transform_2(%arg0: i32) -> (i32, i32) {
    %c0_i32 = arith.constant 0 : i32
    %c0_i32_0 = arith.constant 0 : i32
    %c0_i32_1 = arith.constant 0 : i32
    return %c0_i32, %c0_i32_0 : i32, i32
  }
  func.func @transform_3(%arg0: i32) -> (i32, i32) {
    %c0_i32 = arith.constant 0 : i32
    %c0_i32_0 = arith.constant 0 : i32
    %c0_i32_1 = arith.constant 0 : i32
    return %c0_i32, %c0_i32_0 : i32, i32
  }
  func.func @transform_4(%arg0: i32) -> (i32, i32) {
    %c0_i32 = arith.constant 0 : i32
    %c0_i32_0 = arith.constant 0 : i32
    %c0_i32_1 = arith.constant 0 : i32
    return %c0_i32, %c0_i32_0 : i32, i32
  }
  func.func @transform_5(%arg0: i32) -> (i32, i32) {
    %c0_i32 = arith.constant 0 : i32
    %c0_i32_0 = arith.constant 0 : i32
    %c0_i32_1 = arith.constant 0 : i32
    return %c0_i32, %c0_i32_0 : i32, i32
  }
  func.func @transform_6(%arg0: i32) -> (i32, i32) {
    %c0_i32 = arith.constant 0 : i32
    %c0_i32_0 = arith.constant 0 : i32
    %c0_i32_1 = arith.constant 0 : i32
    return %c0_i32, %c0_i32_0 : i32, i32
  }
  func.func @transform_7(%arg0: i32) -> (i32, i32, i32) {
    %c0_i32 = arith.constant 0 : i32
    %c0_i32_0 = arith.constant 0 : i32
    %c0_i32_1 = arith.constant 0 : i32
    return %arg0, %c0_i32, %c0_i32_0 : i32, i32, i32
  }
  func.func @transform_8(%arg0: i32) -> (i32, i32, i32) {
    %c0_i32 = arith.constant 0 : i32
    %c0_i32_0 = arith.constant 0 : i32
    %c0_i32_1 = arith.constant 0 : i32
    return %arg0, %c0_i32, %c0_i32_0 : i32, i32, i32
  }
}

</mosaic_0001>

<bundles_post_ra>
// kernel: tpu_custom_call.1
= control target key start
LH: loop header
LB: loop body
LE: loop exit
PB: predicated region body
PF: predicated region fallthrough
CT: control target
= control target key end

     0   :  { %s1858_s0 = inlined_call_operand.hbm [shape: f32[2,8,128], index: 0, kind: input, shape index: {}]   ;;  %s1859_s1 = inlined_call_operand.hbm [shape: f32[128,512], index: 1, kind: input, shape index: {}]   ;;  %s1860_s2 = inlined_call_operand.hbm [shape: f32[1,512], index: 2, kind: input, shape index: {}]   ;;  %s1861_s3 = inlined_call_operand.hbm [shape: f32[256,256], index: 3, kind: input, shape index: {}]   ;;  %s1862_s4 = inlined_call_operand.vmem [shape: f32[1,256], index: 4, kind: input, shape index: {}]   ;;  %s1863_s5 = inlined_call_operand.hbm [shape: f32[256,256], index: 5, kind: input, shape index: {}]   ;;  %s1864_s6 = inlined_call_operand.vmem [shape: f32[1,256], index: 6, kind: input, shape index: {}]   ;;  %s1865_s7 = inlined_call_operand.hbm [shape: f32[2,8,256], index: 7, kind: output, shape index: {0}]   ;;  %s1866_s8 = inlined_call_operand.vmem [shape: f32[2,256,8], index: 8, kind: output, shape index: {1}]  }
   0x1   :  { %1871 = sst [smem:[#allocation16_spill]] %s1859_s1 }
   0x2   :  { %1872 = sst [smem:[#allocation17_spill]] %s1860_s2 }
   0x3   :  { %1873 = sst [smem:[#allocation18_spill]] %s1861_s3 }
   0x4   :  { %14 = vsyncpa [#allocation3], 0 }
   0x5   :  { %16 = vsyncpa [#allocation3 + $0x1], 0 }
   0x6   :  { %17 = vsyncpa [#allocation6], 0 }
   0x7   :  { %18 = vsyncpa [#allocation9], 0 }
   0x8   :  { %19 = vsyncpa [#allocation4], 0 }
   0x9   :  { %21 = vsyncpa [#allocation4 + $0x1], 0  ;;  %s1551_s27 = smov 0   ;;  %s1553_s28 = smov 0  }
   0xa   :  { %s1555_s29 = smov 0   ;;  %s1557_s30 = smov 0  }
   0xb LB: > { %s1495_s9 = smov [#allocation5]   ;;  %s1572_s11 = sadd.s32 4294967295, %s1493_s30   ;;  %s1493_s30 = sphi %s1557_s30, %s1896_s30   ;;  %s1489_s29 = sphi %s1555_s29, %s1895_s29   ;;  %s1485_s28 = sphi %s1553_s28, %s1894_s28   ;;  %s1481_s27 = sphi %s1551_s27, %s1893_s27  }
   0xc   : > { %s248_s10 = sshll.u32 %s1495_s9, 4  ;;  %p1173_p0 = scmp.ge.s32.totalorder %s1493_s30, 1  ;;  %s249_s10 = int_to_ptr.vmem [resolvable:$true] %s248_s10 }
   0xd   : > { %p1867_p1 = scmp.eq.s32.totalorder %s1572_s11, 0  ;;  %p236_p2 = scmp.lt.s32.totalorder %s1493_s30, 3 }
   0xe   : > { %s1496_s13 = smov [#allocation8]   ;;  %s1497_s16 = smov [#allocation7]  }
   0xf   : > { %p1577_p3 = pnand %p1173_p0, %p236_p2  ;;  %s272_s14 = sshll.u32 %s1496_s13, 4  ;;  %s1590_s14 = int_to_ptr.vmem [resolvable:$true] %s272_s14 }
  0x10   : > { %s1592_s17 = sshll.u32 %s1497_s16, 4  ;;  %s1300_s18 = scalar_lea.vmem %s249_s10, 8192  ;;  %s263_s17 = int_to_ptr.vmem [resolvable:$true] %s1592_s17 }
  0x11   : > { %s1874_s12 = scalar_select %p1577_p3, 1, 0 }
  0x12   : > { %p1217_p5 = pneg %p1577_p3  ;;  %p1301_p8 = scmp.ne.s32.totalorder %s249_s10, %s1300_s18 }
  0x13   : > { %p1308_p11 = scmp.lt.s32.totalorder %s249_s10, %s249_s10  ;;  %p1309_p12 = scmp.lt.s32.totalorder %s1300_s18, %s1300_s18 }
  0x14   : > { %p1586_p6 = pnand %p1217_p5, %p1867_p1 }
  0x15   : > { %p1310_p13 = por %p1309_p12, %p1308_p11 }
  0x16   : > { %p1291_p7 = pneg %p1586_p6 }
  0x18   : > { %p1303_p9 = pnand %p1301_p8, %p1291_p7 }
  0x1a   : > { %p1304_p10 = pneg %p1303_p9 }
  0x1c   : > { %p1311_p0 = pnand %p1310_p13, %p1304_p10 }
  0x1e   : > { %1314 = shalt.err (!%p1311_p0)
}
  0x1f   : > { %s1498_s19 = smov 512   ;;  %s1499_s20 = smov 32  }
  0x20   : > { %s1876_s1 = sld [smem:[#allocation16_spill]]  ;;  %s1326_s23 = scalar_lea.vmem %s1590_s14, 8192 }
  0x21   : > { %p1327_p2 = scmp.ne.s32.totalorder %s1590_s14, %s1326_s23  ;;  %p1334_p9 = scmp.lt.s32.totalorder %s1590_s14, %s1590_s14 }
  0x22   : > { %p1335_p10 = scmp.lt.s32.totalorder %s1326_s23, %s1326_s23 }
  0x23   : > { %p1329_p5 = pnand %p1327_p2, %p1291_p7 }
  0x24   : > { %p1336_p11 = por %p1335_p10, %p1334_p9 }
  0x25   : > { %p1330_p8 = pneg %p1329_p5 }
  0x26   : > { %1220 = dma.hbm_to_vmem [thread:$0]  (!%p1586_p6), %s1876_s1, 8192, %s249_s10, [#allocation6], %s1498_s19, %s1498_s19, %s1499_s20  }
  0x27   : > { %p1337_p12 = pnand %p1336_p11, %p1330_p8 }
  0x29   : > { %1340 = shalt.err (!%p1337_p12)
}
  0x2a   : > { %s1500_s24 = smov 256   ;;  %s1501_s25 = smov 16  }
  0x2b   : > { %s1877_s3 = sld [smem:[#allocation18_spill]]  ;;  %s1352_s10 = scalar_lea.vmem %s263_s17, 64 }
  0x2c   : > { %p1353_p13 = scmp.ne.s32.totalorder %s263_s17, %s1352_s10  ;;  %p1360_p5 = scmp.lt.s32.totalorder %s263_s17, %s263_s17 }
  0x2d   : > { %p1361_p8 = scmp.lt.s32.totalorder %s1352_s10, %s1352_s10 }
  0x2e   : > { %p1355_p0 = pnand %p1353_p13, %p1291_p7 }
  0x2f   : > { %p1362_p9 = por %p1361_p8, %p1360_p5 }
  0x30   : > { %p1356_p2 = pneg %p1355_p0 }
  0x31   : > { %1226 = dma.hbm_to_vmem [thread:$0]  (!%p1586_p6), %s1877_s3, 8192, %s1590_s14, [#allocation9], %s1500_s24, %s1500_s24, %s1501_s25  }
  0x32   : > { %p1363_p10 = pnand %p1362_p9, %p1356_p2 }
  0x34   : > { %1366 = shalt.err (!%p1363_p10)
}
  0x35   : > { %s1878_s2 = sld [smem:[#allocation17_spill]]  ;;  %s1502_s14 = smov [#allocation10]  }
  0x36   : > { %s288_s18 = sshll.u32 %s1502_s14, 4  ;;  %s289_s18 = int_to_ptr.vmem [resolvable:$true] %s288_s18 }
  0x37   : > { %s1378_s19 = scalar_lea.vmem %s289_s18, 8192  ;;  %p1386_p0 = scmp.lt.s32.totalorder %s289_s18, %s289_s18 }
  0x38   : > { %p1379_p11 = scmp.ne.s32.totalorder %s289_s18, %s1378_s19  ;;  %p1387_p5 = scmp.lt.s32.totalorder %s1378_s19, %s1378_s19 }
  0x3a   : > { %p1381_p12 = pnand %p1379_p11, %p1291_p7  ;;  %p1388_p2 = por %p1387_p5, %p1386_p0 }
  0x3b   : > { %1223 = dma.hbm_to_vmem [thread:$0]  (!%p1586_p6), %s1878_s2, 64, %s263_s17, [#allocation6]  }
  0x3c   : > { %p1382_p13 = pneg %p1381_p12 }
  0x3e   : > { %p1389_p8 = pnand %p1388_p2, %p1382_p13 }
  0x40   : > { %1392 = shalt.err (!%p1389_p8)
}
  0x41   : > { %1229 = dma.hbm_to_vmem [thread:$0]  (!%p1586_p6), %s1863_s5, 8192, %s289_s18, [#allocation9], %s1500_s24, %s1500_s24, %s1501_s25  }
  0x42   : > { %s1172_s17 = sadd.s32 4294967294, %s1493_s30   ;;  %s1636_s15 = sadd.s32 1, %s1493_s30  }
  0x43   : > { %s31_s22 = ssub.s32 %s1493_s30, %s1636_s15  ;;  %s34_s23 = sadd.s32 1, %s1489_s29 }
  0x44   : > { %p32_p7 = scmp.eq.s32.totalorder %s31_s22, 0  ;;  %p41_p9 = scmp.ne.s32.totalorder %s1489_s29, %s1485_s28 }
  0x45   : > { %p42_p10 = scmp.eq.s32.totalorder %s1493_s30, 0  ;;  %p47_p11 = scmp.ne.s32.totalorder %s1485_s28, %s1481_s27 }
  0x46   : > { %s1647_s26 = scalar_select %p32_p7, %s1489_s29, %s34_s23  }
  0x47   : > { %p1649_p12 = por %p42_p10, %p41_p9  ;;  %p1655_p6 = por %p1867_p1, %p47_p11 }
  0x48   : > { %p197_p13 = scmp.eq.s32.totalorder %s1572_s11, 1  ;;  %p203_p0 = scmp.eq.s32.totalorder %s1172_s17, 1 }
  0x49   : > { %s1880_s24 = scalar_select %p1655_p6, 1, 0 }
  0x4a   : > { %p1242_p5 = scmp.lt.s32.totalorder %s1493_s30, 2  ;;  %s305_s25 = sand.u32 1, %s1489_s29  }
  0x4b   : > { %p1662_p2 = por %p197_p13, %p41_p9  ;;  %p1666_p8 = por %p203_p0, %p47_p11 }
  0x4c   : > { %s1179_s16 = sshll.u32 %s305_s25, 3  ;;  %s1180_s14 = sshll.u32 %s1493_s30, 7 }
  0x4d   : > { %s1881_s10 = scalar_select %p1662_p2, 1, 0 }
  0x4e   : > { %s1882_s13 = scalar_select %p1666_p8, 1, 0 }
  0x4f   : > { %s1674_s20 = scalar_lea.hbm %s1858_s0, %s1180_s14  ;;  %s309_s21 = scalar_lea.vmem [#allocation2], %s1179_s16 }
  0x50   : > { %s316_s17 = sshll.u32 %s309_s21, 4  ;;  %p1678_p7 = pnand %p1242_p5, %p1649_p12  ;;  %s317_s17 = int_to_ptr.vmem [resolvable:$true] %s316_s17 }
  0x51   : > { %s306_s23 = scalar_lea.sflag [#allocation3], %s305_s25  ;;  %s1393_s1 = scalar_lea.hbm %s1674_s20, 128 }
  0x52   : > { %p1394_p9 = scmp.ne.s32.totalorder %s1674_s20, %s1393_s1  ;;  %p1395_p10 = pneg %p1678_p7 }
  0x53   : > { %s1398_s19 = scalar_lea.hbm %s1858_s0, 256  ;;  %p1399_p0 = scmp.lt.s32.totalorder %s1674_s20, %s1858_s0 }
  0x54   : > { %p1396_p11 = pnand %p1395_p10, %p1394_p9  ;;  %p1400_p12 = scmp.lt.s32.totalorder %s1398_s19, %s1393_s1 }
  0x56   : > { %p1397_p13 = pneg %p1396_p11  ;;  %p1401_p5 = por %p1400_p12, %p1399_p0 }
  0x58   : > { %p1402_p4 = pnand %p1401_p5, %p1397_p13 }
  0x5a   : > { %1405 = shalt.err (!%p1402_p4)
}
  0x5b   : > { %s1406_s9 = scalar_lea.vmem %s317_s17, 128  ;;  %s1503_s25 = smov [#allocation2]  }
  0x5c   : > { %p1407_p1 = scmp.ne.s32.totalorder %s317_s17, %s1406_s9  ;;  %s1411_s2 = sshll.u32 %s1503_s25, 4  ;;  %s1412_s2 = int_to_ptr.vmem [resolvable:$false] %s1411_s2 }
  0x5d   : > { %s1413_s3 = scalar_lea.vmem %s1412_s2, 256  ;;  %p1414_p9 = scmp.lt.s32.totalorder %s317_s17, %s1412_s2 }
  0x5e   : > { %p1409_p8 = pnand %p1407_p1, %p1395_p10  ;;  %p1415_p11 = scmp.lt.s32.totalorder %s1413_s3, %s1406_s9 }
  0x60   : > { %p1410_p2 = pneg %p1409_p8  ;;  %p1416_p6 = por %p1415_p11, %p1414_p9 }
  0x62   : > { %p1417_p3 = pnand %p1416_p6, %p1410_p2 }
  0x64   : > { %1420 = shalt.err (!%p1417_p3)
}
  0x65   : > { %1233 = dma.hbm_to_vmem [thread:$0]  (!%p1678_p7), %s1674_s20, 128, %s317_s17, %s306_s23  }
  0x66   : > { %p1884_p13 = scmp.ne.s32.totalorder %s1874_s12, 0 }
  0x67   : > { %s1699_s1 = sand.u32 (!%p1884_p13), 1, %s1485_s28   ;;  %p1885_p1 = scmp.ne.s32.totalorder (!%p1884_p13), %s1880_s24, 0 }
  0x68   : > { %325 = sbr.rel (%p1884_p13) target bundleno = 795 (0x31b), region = 48  ;;  %s1182_s14 = sshll.u32 (!%p1884_p13), %s1699_s1, 3 }
  0x69   : > { %s328_s18 = scalar_lea.sflag (!%p1884_p13), [#allocation3], %s1699_s1  ;;  %s1703_s2 = scalar_lea.vmem (!%p1884_p13), [#allocation2], %s1182_s14 }
  0x6d   : > { %1464 = dma.done.wait (%p1885_p1), %s328_s18, 128  }
  0x6e   : > { %1466 = vsyncadd (%p1885_p1), %s328_s18, 4294967168  ;;  %p1886_p3 = scmp.eq.s32.totalorder %s1572_s11, 0 }
  0x70   : > { %1468 = dma.done.wait (%p1886_p3), [#allocation6], 8256   ;;  %p1887_p4 = pmov %p1886_p3 }
  0x71   : > { %p1888_p6 = pmov %p1886_p3 }
  0x72   : > { %1470 = vsyncadd (%p1887_p4), [#allocation6], 4294959040 }
  0x73   : > { %1472 = dma.done.wait (%p1888_p6), [#allocation9], 16384   ;;  %p1889_p2 = pmov %p1886_p3 }
  0x74   : > { %v1504_v0 = vmov 0.0   ;;  %v454_v1 = vld [vmem:[#allocation5 + $0x1f8] sm:$0xff]  ;;  %v453_v2 = vld [vmem:[#allocation5 + $0x1f0] sm:$0xff]  ;;  %v798_v37 = vld [vmem:[#allocation10 + $0xe0] sm:$0xff]  ;;  %s1187_s24 = sshll.u32 %s1699_s1, 4  ;;  %p385_p8 = scmp.lt.s32.totalorder %s1572_s11, 1 }
  0x75   : > { %1474 = vsyncadd (%p1889_p2), [#allocation9], 4294950912  ;;  %612 = vmatprep.mubr.f32.mxu1 %v1504_v0  ;;  %541 = vmatprep.mubr.f32.mxu0 %v1504_v0  ;;  %v450_v3 = vld [vmem:[#allocation5 + $0x1d8] sm:$0xff]  ;;  %v449_v4 = vld [vmem:[#allocation5 + $0x1d0] sm:$0xff]  ;;  %s377_s23 = scalar_lea.vmem [#allocation11], %s1187_s24  ;;  %s1196_s16 = sshll.u32 %s1572_s11, 8 }
  0x76   : > { %548 = vmatprep.subr.mxu1 %v454_v1  ;;  %v446_v5 = vld [vmem:[#allocation5 + $0x1b8] sm:$0xff]  ;;  %v445_v6 = vld [vmem:[#allocation5 + $0x1b0] sm:$0xff]  ;;  %v794_v41 = vld [vmem:[#allocation10 + $0xc0] sm:$0xff]  ;;  %s386_s22 = scalar_select %p385_p8, %s1572_s11, 1  ;;  %vm983_vm0 = vcmask 64512  }
  0x77   : > { %549 = vmatpush1.msra.mxu1 %v453_v2  ;;  %v442_v7 = vld [vmem:[#allocation5 + $0x198] sm:$0xff]  ;;  %v441_v8 = vld [vmem:[#allocation5 + $0x190] sm:$0xff]  ;;  %v790_v45 = vld [vmem:[#allocation10 + $0xa0] sm:$0xff]  ;;  %s1036_s21 = sshll.u32 %s377_s23, 4  ;;  %s1752_s14 = scalar_lea.hbm %s1865_s7, %s1196_s16  ;;  %s1037_s21 = int_to_ptr.vmem [resolvable:$true] %s1036_s21 }
  0x78   : > { %550 = vmatprep.subr.mxu1 %v450_v3  ;;  %v438_v9 = vld [vmem:[#allocation5 + $0x178] sm:$0xff]  ;;  %v437_v10 = vld [vmem:[#allocation5 + $0x170] sm:$0xff]  ;;  %v786_v49 = vld [vmem:[#allocation10 + $0x80] sm:$0xff]  ;;  %s1195_s19 = sshll.u32 %s386_s22, 8  ;;  %s1017_s12 = scalar_lea.sflag [#allocation4], %s1699_s1 }
  0x79   : > { %551 = vmatpush1.msra.mxu1 %v449_v4  ;;  %v434_v11 = vld [vmem:[#allocation5 + $0x158] sm:$0xff]  ;;  %v433_v12 = vld [vmem:[#allocation5 + $0x150] sm:$0xff]  ;;  %v782_v53 = vld [vmem:[#allocation10 + $0x60] sm:$0xff]  ;;  %s1757_s3 = scalar_lea.vmem %s1866_s8, %s1195_s19  ;;  %s1421_s20 = scalar_lea.vmem %s1037_s21, 256 }
  0x7a   : > { %552 = vmatprep.subr.mxu1 %v446_v5  ;;  %v430_v13 = vld [vmem:[#allocation5 + $0x138] sm:$0xff]  ;;  %v429_v14 = vld [vmem:[#allocation5 + $0x130] sm:$0xff]  ;;  %v778_v57 = vld [vmem:[#allocation10 + $0x40] sm:$0xff]  ;;  %p1422_p7 = scmp.ne.s32.totalorder %s1037_s21, %s1421_s20  ;;  %p1890_p10 = scmp.ne.s32.totalorder %s1881_s10, 0 }
  0x7b   : > { %553 = vmatpush1.msra.mxu1 %v445_v6  ;;  %v426_v15 = vld [vmem:[#allocation5 + $0x118] sm:$0xff]  ;;  %v425_v16 = vld [vmem:[#allocation5 + $0x110] sm:$0xff]  ;;  %v774_v61 = vld [vmem:[#allocation10 + $0x20] sm:$0xff]  ;;  %s1505_s11 = smov [#allocation11]  }
  0x7c   : > { %554 = vmatprep.subr.mxu1 %v442_v7  ;;  %v422_v17 = vld [vmem:[#allocation5 + $0xf8] sm:$0xff]  ;;  %v421_v18 = vld [vmem:[#allocation5 + $0xf0] sm:$0xff]  ;;  %v770_v1 = vld [vmem:[#allocation10] sm:$0xff]  ;;  %p1423_p0 = pnand %p1422_p7, %p1890_p10  ;;  %s1425_s24 = sshll.u32 %s1505_s11, 4  ;;  %s1426_s24 = int_to_ptr.vmem [resolvable:$false] %s1425_s24 }
  0x7d   : > { %555 = vmatpush1.msra.mxu1 %v441_v8  ;;  %v418_v19 = vld [vmem:[#allocation5 + $0xd8] sm:$0xff]  ;;  %v417_v20 = vld [vmem:[#allocation5 + $0xd0] sm:$0xff]  ;;  %v830_v5 = vld [vmem:[#allocation10 + $0x1e0] sm:$0xff]  ;;  %s1427_s17 = scalar_lea.vmem %s1426_s24, 512  ;;  %p1428_p5 = scmp.lt.s32.totalorder %s1037_s21, %s1426_s24 }
  0x7e   : > { %556 = vmatprep.subr.mxu1 %v438_v9  ;;  %v414_v21 = vld [vmem:[#allocation5 + $0xb8] sm:$0xff]  ;;  %v413_v22 = vld [vmem:[#allocation5 + $0xb0] sm:$0xff]  ;;  %v826_v9 = vld [vmem:[#allocation10 + $0x1c0] sm:$0xff]  ;;  %p1424_p12 = pneg %p1423_p0  ;;  %p1429_p9 = scmp.lt.s32.totalorder %s1427_s17, %s1421_s20 }
  0x7f   : > { %557 = vmatpush1.msra.mxu1 %v437_v10  ;;  %v410_v23 = vld [vmem:[#allocation5 + $0x98] sm:$0xff]  ;;  %v409_v24 = vld [vmem:[#allocation5 + $0x90] sm:$0xff] }
  0x80   : > { %558 = vmatprep.subr.mxu1 %v434_v11  ;;  %v406_v25 = vld [vmem:[#allocation5 + $0x78] sm:$0xff]  ;;  %v405_v26 = vld [vmem:[#allocation5 + $0x70] sm:$0xff]  ;;  %p1430_p11 = por %p1429_p9, %p1428_p5 }
  0x81   : > { %559 = vmatpush1.msra.mxu1 %v433_v12  ;;  %v402_v27 = vld [vmem:[#allocation5 + $0x58] sm:$0xff]  ;;  %v401_v28 = vld [vmem:[#allocation5 + $0x50] sm:$0xff] }
  0x82   : > { %560 = vmatprep.subr.mxu1 %v430_v13  ;;  %v398_v29 = vld [vmem:[#allocation5 + $0x38] sm:$0xff]  ;;  %v397_v30 = vld [vmem:[#allocation5 + $0x30] sm:$0xff]  ;;  %v822_v13 = vld [vmem:[#allocation10 + $0x1a0] sm:$0xff]  ;;  %p1431_p13 = pnand %p1430_p11, %p1424_p12 }
  0x83   : > { %561 = vmatpush1.msra.mxu1 %v429_v14  ;;  %v394_v31 = vld [vmem:[#allocation5 + $0x18] sm:$0xff]  ;;  %v393_v32 = vld [vmem:[#allocation5 + $0x10] sm:$0xff] }
  0x84   : > { %562 = vmatprep.subr.mxu1 %v426_v15  ;;  %v1718_v33 = vld [vmem:[%s1703_s2] sm:$0xff] }
  0x85   : > { %563 = vmatpush1.msra.mxu1 %v425_v16  ;;  %v801_v34 = vld [vmem:[#allocation10 + $0xf8] sm:$0xff]  ;;  %v800_v35 = vld [vmem:[#allocation10 + $0xf0] sm:$0xff]  ;;  %v799_v36 = vld [vmem:[#allocation10 + $0xe8] sm:$0xff] }
  0x86   : > { %564 = vmatprep.subr.mxu1 %v422_v17  ;;  %v797_v38 = vld [vmem:[#allocation10 + $0xd8] sm:$0xff]  ;;  %v796_v39 = vld [vmem:[#allocation10 + $0xd0] sm:$0xff]  ;;  %v795_v40 = vld [vmem:[#allocation10 + $0xc8] sm:$0xff] }
  0x87   : > { %565 = vmatpush1.msra.mxu1 %v421_v18  ;;  %v793_v42 = vld [vmem:[#allocation10 + $0xb8] sm:$0xff]  ;;  %v792_v43 = vld [vmem:[#allocation10 + $0xb0] sm:$0xff]  ;;  %v791_v44 = vld [vmem:[#allocation10 + $0xa8] sm:$0xff] }
  0x88   : > { %566 = vmatprep.subr.mxu1 %v418_v19  ;;  %v789_v46 = vld [vmem:[#allocation10 + $0x98] sm:$0xff]  ;;  %v788_v47 = vld [vmem:[#allocation10 + $0x90] sm:$0xff]  ;;  %v787_v48 = vld [vmem:[#allocation10 + $0x88] sm:$0xff] }
  0x89   : > { %567 = vmatpush1.msra.mxu1 %v417_v20  ;;  %v785_v50 = vld [vmem:[#allocation10 + $0x78] sm:$0xff]  ;;  %v784_v51 = vld [vmem:[#allocation10 + $0x70] sm:$0xff]  ;;  %v783_v52 = vld [vmem:[#allocation10 + $0x68] sm:$0xff] }
  0x8a   : > { %568 = vmatprep.subr.mxu1 %v414_v21  ;;  %v781_v54 = vld [vmem:[#allocation10 + $0x58] sm:$0xff]  ;;  %v780_v55 = vld [vmem:[#allocation10 + $0x50] sm:$0xff]  ;;  %v779_v56 = vld [vmem:[#allocation10 + $0x48] sm:$0xff] }
  0x8b   : > { %569 = vmatpush1.msra.mxu1 %v413_v22  ;;  %v777_v58 = vld [vmem:[#allocation10 + $0x38] sm:$0xff]  ;;  %v776_v59 = vld [vmem:[#allocation10 + $0x30] sm:$0xff]  ;;  %v775_v60 = vld [vmem:[#allocation10 + $0x28] sm:$0xff] }
  0x8c   : > { %570 = vmatprep.subr.mxu1 %v410_v23  ;;  %v773_v62 = vld [vmem:[#allocation10 + $0x18] sm:$0xff]  ;;  %v772_v63 = vld [vmem:[#allocation10 + $0x10] sm:$0xff]  ;;  %v771_v0 = vld [vmem:[#allocation10 + $0x8] sm:$0xff] }
  0x8d   : > { %571 = vmatpush1.msra.mxu1 %v409_v24  ;;  %v833_v2 = vld [vmem:[#allocation10 + $0x1f8] sm:$0xff]  ;;  %v832_v3 = vld [vmem:[#allocation10 + $0x1f0] sm:$0xff]  ;;  %v831_v4 = vld [vmem:[#allocation10 + $0x1e8] sm:$0xff] }
  0x8e   : > { %572 = vmatprep.subr.mxu1 %v406_v25  ;;  %v829_v6 = vld [vmem:[#allocation10 + $0x1d8] sm:$0xff]  ;;  %v828_v7 = vld [vmem:[#allocation10 + $0x1d0] sm:$0xff]  ;;  %v827_v8 = vld [vmem:[#allocation10 + $0x1c8] sm:$0xff] }
  0x8f   : > { %573 = vmatpush1.msra.mxu1 %v405_v26  ;;  %v825_v10 = vld [vmem:[#allocation10 + $0x1b8] sm:$0xff]  ;;  %v824_v11 = vld [vmem:[#allocation10 + $0x1b0] sm:$0xff]  ;;  %v823_v12 = vld [vmem:[#allocation10 + $0x1a8] sm:$0xff] }
  0x90   : > { %574 = vmatprep.subr.mxu1 %v402_v27  ;;  %v821_v14 = vld [vmem:[#allocation10 + $0x198] sm:$0xff]  ;;  %v820_v15 = vld [vmem:[#allocation10 + $0x190] sm:$0xff]  ;;  %v819_v16 = vld [vmem:[#allocation10 + $0x188] sm:$0xff] }
  0x91   : > { %575 = vmatpush1.msra.mxu1 %v401_v28  ;;  %v818_v17 = vld [vmem:[#allocation10 + $0x180] sm:$0xff]  ;;  %v817_v18 = vld [vmem:[#allocation10 + $0x178] sm:$0xff]  ;;  %v816_v19 = vld [vmem:[#allocation10 + $0x170] sm:$0xff] }
  0x92   : > { %576 = vmatprep.subr.mxu1 %v398_v29  ;;  %v815_v20 = vld [vmem:[#allocation10 + $0x168] sm:$0xff]  ;;  %v814_v21 = vld [vmem:[#allocation10 + $0x160] sm:$0xff]  ;;  %v813_v22 = vld [vmem:[#allocation10 + $0x158] sm:$0xff] }
  0x93   : > { %577 = vmatpush1.msra.mxu1 %v397_v30  ;;  %v812_v23 = vld [vmem:[#allocation10 + $0x150] sm:$0xff]  ;;  %v811_v24 = vld [vmem:[#allocation10 + $0x148] sm:$0xff]  ;;  %v810_v25 = vld [vmem:[#allocation10 + $0x140] sm:$0xff] }
  0x94   : > { %578 = vmatprep.subr.mxu1 %v394_v31  ;;  %v809_v26 = vld [vmem:[#allocation10 + $0x138] sm:$0xff]  ;;  %v808_v27 = vld [vmem:[#allocation10 + $0x130] sm:$0xff]  ;;  %v807_v28 = vld [vmem:[#allocation10 + $0x128] sm:$0xff] }
  0x95   : > { %579 = vmatpush1.msra.mxu1 %v393_v32  ;;  %v806_v29 = vld [vmem:[#allocation10 + $0x120] sm:$0xff]  ;;  %v805_v30 = vld [vmem:[#allocation10 + $0x118] sm:$0xff]  ;;  %v804_v31 = vld [vmem:[#allocation10 + $0x110] sm:$0xff] }
  0x96   : > { %613 = vmatmul.mubr.f32.vlgmr.msra.gmra.mxu1 %v1718_v33  ;;  %846 = vmatprep.subr.mxu1 %v801_v34  ;;  %v803_v32 = vld [vmem:[#allocation10 + $0x108] sm:$0xff]  ;;  %v802_v34 = vld [vmem:[#allocation10 + $0x100] sm:$0xff] }
  0x97   : > { %847 = vmatpush1.msra.mxu1 %v800_v35  ;;  %v452_v35 = vld [vmem:[#allocation5 + $0x1e8] sm:$0xff] }
  0x98   : > { %848 = vmatprep.subr.mxu1 %v799_v36  ;;  %v451_v36 = vld [vmem:[#allocation5 + $0x1e0] sm:$0xff]  ;;  %477 = vmatprep.subr.mxu0 %v452_v35 }
  0x99   : > { %849 = vmatpush1.msra.mxu1 %v798_v37  ;;  %v448_v37 = vld [vmem:[#allocation5 + $0x1c8] sm:$0xff]  ;;  %478 = vmatpush1.msra.mxu0 %v451_v36  ;;  %v634_v36 = vld [vmem:[#allocation8 + $0x58] sm:$0xff] }
  0x9a   : > { %850 = vmatprep.subr.mxu1 %v797_v38  ;;  %v447_v38 = vld [vmem:[#allocation5 + $0x1c0] sm:$0xff]  ;;  %479 = vmatprep.subr.mxu0 %v448_v37  ;;  %v633_v37 = vld [vmem:[#allocation8 + $0x50] sm:$0xff] }
  0x9b   : > { %851 = vmatpush1.msra.mxu1 %v796_v39  ;;  %v444_v39 = vld [vmem:[#allocation5 + $0x1a8] sm:$0xff]  ;;  %480 = vmatpush1.msra.mxu0 %v447_v38 }
  0x9c   : > { %852 = vmatprep.subr.mxu1 %v795_v40  ;;  %v443_v40 = vld [vmem:[#allocation5 + $0x1a0] sm:$0xff]  ;;  %481 = vmatprep.subr.mxu0 %v444_v39  ;;  %v632_v38 = vld [vmem:[#allocation8 + $0x48] sm:$0xff] }
  0x9d   : > { %853 = vmatpush1.msra.mxu1 %v794_v41  ;;  %v440_v41 = vld [vmem:[#allocation5 + $0x188] sm:$0xff]  ;;  %482 = vmatpush1.msra.mxu0 %v443_v40  ;;  %v630_v40 = vld [vmem:[#allocation8 + $0x38] sm:$0xff] }
  0x9e   : > { %854 = vmatprep.subr.mxu1 %v793_v42  ;;  %v439_v42 = vld [vmem:[#allocation5 + $0x180] sm:$0xff]  ;;  %483 = vmatprep.subr.mxu0 %v440_v41  ;;  %v629_v41 = vld [vmem:[#allocation8 + $0x30] sm:$0xff] }
  0x9f   : > { %855 = vmatpush1.msra.mxu1 %v792_v43  ;;  %v436_v43 = vld [vmem:[#allocation5 + $0x168] sm:$0xff]  ;;  %484 = vmatpush1.msra.mxu0 %v439_v42 }
  0xa0   : > { %856 = vmatprep.subr.mxu1 %v791_v44  ;;  %v435_v44 = vld [vmem:[#allocation5 + $0x160] sm:$0xff]  ;;  %485 = vmatprep.subr.mxu0 %v436_v43  ;;  %v628_v42 = vld [vmem:[#allocation8 + $0x28] sm:$0xff] }
  0xa1   : > { %857 = vmatpush1.msra.mxu1 %v790_v45  ;;  %v432_v45 = vld [vmem:[#allocation5 + $0x148] sm:$0xff]  ;;  %486 = vmatpush1.msra.mxu0 %v435_v44  ;;  %v626_v44 = vld [vmem:[#allocation8 + $0x18] sm:$0xff] }
  0xa2   : > { %858 = vmatprep.subr.mxu1 %v789_v46  ;;  %v431_v46 = vld [vmem:[#allocation5 + $0x140] sm:$0xff]  ;;  %487 = vmatprep.subr.mxu0 %v432_v45  ;;  %v625_v45 = vld [vmem:[#allocation8 + $0x10] sm:$0xff] }
  0xa3   : > { %859 = vmatpush1.msra.mxu1 %v788_v47  ;;  %v428_v47 = vld [vmem:[#allocation5 + $0x128] sm:$0xff]  ;;  %488 = vmatpush1.msra.mxu0 %v431_v46 }
  0xa4   : > { %860 = vmatprep.subr.mxu1 %v787_v48  ;;  %v427_v48 = vld [vmem:[#allocation5 + $0x120] sm:$0xff]  ;;  %489 = vmatprep.subr.mxu0 %v428_v47  ;;  %v624_v46 = vld [vmem:[#allocation8 + $0x8] sm:$0xff] }
  0xa5   : > { %861 = vmatpush1.msra.mxu1 %v786_v49  ;;  %v424_v49 = vld [vmem:[#allocation5 + $0x108] sm:$0xff]  ;;  %490 = vmatpush1.msra.mxu0 %v427_v48  ;;  %v686_v48 = vld [vmem:[#allocation8 + $0x1f8] sm:$0xff] }
  0xa6   : > { %862 = vmatprep.subr.mxu1 %v785_v50  ;;  %v423_v50 = vld [vmem:[#allocation5 + $0x100] sm:$0xff]  ;;  %491 = vmatprep.subr.mxu0 %v424_v49  ;;  %v685_v49 = vld [vmem:[#allocation8 + $0x1f0] sm:$0xff] }
  0xa7   : > { %863 = vmatpush1.msra.mxu1 %v784_v51  ;;  %v420_v51 = vld [vmem:[#allocation5 + $0xe8] sm:$0xff]  ;;  %492 = vmatpush1.msra.mxu0 %v423_v50 }
  0xa8   : > { %864 = vmatprep.subr.mxu1 %v783_v52  ;;  %v419_v52 = vld [vmem:[#allocation5 + $0xe0] sm:$0xff]  ;;  %493 = vmatprep.subr.mxu0 %v420_v51  ;;  %v684_v50 = vld [vmem:[#allocation8 + $0x1e8] sm:$0xff] }
  0xa9   : > { %865 = vmatpush1.msra.mxu1 %v782_v53  ;;  %v416_v53 = vld [vmem:[#allocation5 + $0xc8] sm:$0xff]  ;;  %494 = vmatpush1.msra.mxu0 %v419_v52  ;;  %v682_v52 = vld [vmem:[#allocation8 + $0x1d8] sm:$0xff] }
  0xaa   : > { %866 = vmatprep.subr.mxu1 %v781_v54  ;;  %v415_v54 = vld [vmem:[#allocation5 + $0xc0] sm:$0xff]  ;;  %495 = vmatprep.subr.mxu0 %v416_v53  ;;  %v681_v53 = vld [vmem:[#allocation8 + $0x1d0] sm:$0xff] }
  0xab   : > { %867 = vmatpush1.msra.mxu1 %v780_v55  ;;  %v412_v55 = vld [vmem:[#allocation5 + $0xa8] sm:$0xff]  ;;  %496 = vmatpush1.msra.mxu0 %v415_v54 }
  0xac   : > { %868 = vmatprep.subr.mxu1 %v779_v56  ;;  %v411_v56 = vld [vmem:[#allocation5 + $0xa0] sm:$0xff]  ;;  %497 = vmatprep.subr.mxu0 %v412_v55  ;;  %v680_v54 = vld [vmem:[#allocation8 + $0x1c8] sm:$0xff] }
  0xad   : > { %869 = vmatpush1.msra.mxu1 %v778_v57  ;;  %v408_v57 = vld [vmem:[#allocation5 + $0x88] sm:$0xff]  ;;  %498 = vmatpush1.msra.mxu0 %v411_v56  ;;  %v678_v56 = vld [vmem:[#allocation8 + $0x1b8] sm:$0xff] }
  0xae   : > { %870 = vmatprep.subr.mxu1 %v777_v58  ;;  %v407_v58 = vld [vmem:[#allocation5 + $0x80] sm:$0xff]  ;;  %499 = vmatprep.subr.mxu0 %v408_v57  ;;  %v677_v57 = vld [vmem:[#allocation8 + $0x1b0] sm:$0xff] }
  0xaf   : > { %871 = vmatpush1.msra.mxu1 %v776_v59  ;;  %v404_v59 = vld [vmem:[#allocation5 + $0x68] sm:$0xff]  ;;  %500 = vmatpush1.msra.mxu0 %v407_v58 }
  0xb0   : > { %872 = vmatprep.subr.mxu1 %v775_v60  ;;  %v403_v60 = vld [vmem:[#allocation5 + $0x60] sm:$0xff]  ;;  %501 = vmatprep.subr.mxu0 %v404_v59  ;;  %v676_v58 = vld [vmem:[#allocation8 + $0x1a8] sm:$0xff] }
  0xb1   : > { %873 = vmatpush1.msra.mxu1 %v774_v61  ;;  %v400_v61 = vld [vmem:[#allocation5 + $0x48] sm:$0xff]  ;;  %502 = vmatpush1.msra.mxu0 %v403_v60  ;;  %v674_v60 = vld [vmem:[#allocation8 + $0x198] sm:$0xff] }
  0xb2   : > { %874 = vmatprep.subr.mxu1 %v773_v62  ;;  %v399_v62 = vld [vmem:[#allocation5 + $0x40] sm:$0xff]  ;;  %503 = vmatprep.subr.mxu0 %v400_v61  ;;  %v673_v61 = vld [vmem:[#allocation8 + $0x190] sm:$0xff] }
  0xb3   : > { %875 = vmatpush1.msra.mxu1 %v772_v63  ;;  %v396_v63 = vld [vmem:[#allocation5 + $0x28] sm:$0xff]  ;;  %504 = vmatpush1.msra.mxu0 %v399_v62 }
  0xb4   : > { %876 = vmatprep.subr.mxu1 %v771_v0  ;;  %v395_v0 = vld [vmem:[#allocation5 + $0x20] sm:$0xff]  ;;  %505 = vmatprep.subr.mxu0 %v396_v63  ;;  %v672_v62 = vld [vmem:[#allocation8 + $0x188] sm:$0xff] }
  0xb5   : > { %877 = vmatpush1.msra.mxu1 %v770_v1  ;;  %v392_v1 = vld [vmem:[#allocation5 + $0x8] sm:$0xff]  ;;  %506 = vmatpush1.msra.mxu0 %v395_v0 }
  0xb6   : > { %878 = vmatprep.subr.mxu1 %v833_v2  ;;  %v391_v2 = vld [vmem:[#allocation5] sm:$0xff]  ;;  %507 = vmatprep.subr.mxu0 %v392_v1 }
  0xb7   : > { %879 = vmatpush2.msra.mxu1 %v832_v3  ;;  %v654_v3 = vld [vmem:[#allocation8 + $0xf8] sm:$0xff]  ;;  %508 = vmatpush1.msra.mxu0 %v391_v2  ;;  %v635_v35 = vld [vmem:[#allocation8 + $0x60] sm:$0xff]  ;;  %v669_v2 = vld [vmem:[#allocation8 + $0x170] sm:$0xff] }
  0xb8   : > { %880 = vmatprep.subr.mxu1 %v831_v4  ;;  %v653_v4 = vld [vmem:[#allocation8 + $0xf0] sm:$0xff]  ;;  %542 = vmatmul.mubr.f32.vlgmr.msra.gmra.mxu0 %v1718_v33  ;;  %v642_v33 = vld [vmem:[#allocation8 + $0x98] sm:$0xff]  ;;  %v631_v39 = vld [vmem:[#allocation8 + $0x40] sm:$0xff] }
  0xb9   : > { %881 = vmatpush2.msra.mxu1 %v830_v5  ;;  %v652_v5 = vld [vmem:[#allocation8 + $0xe8] sm:$0xff]  ;;  %699 = vmatprep.subr.mxu0 %v654_v3  ;;  %v627_v43 = vld [vmem:[#allocation8 + $0x20] sm:$0xff]  ;;  %v670_v1 = vld [vmem:[#allocation8 + $0x178] sm:$0xff] }
  0xba   : > { %882 = vmatprep.subr.mxu1 %v829_v6  ;;  %v651_v6 = vld [vmem:[#allocation8 + $0xe0] sm:$0xff]  ;;  %700 = vmatpush1.msra.mxu0 %v653_v4  ;;  %v668_v3 = vld [vmem:[#allocation8 + $0x168] sm:$0xff] }
  0xbb   : > { %883 = vmatpush2.msra.mxu1 %v828_v7  ;;  %v650_v7 = vld [vmem:[#allocation8 + $0xd8] sm:$0xff]  ;;  %701 = vmatprep.subr.mxu0 %v652_v5  ;;  %v623_v47 = vld [vmem:[#allocation8] sm:$0xff] }
  0xbc   : > { %884 = vmatprep.subr.mxu1 %v827_v8  ;;  %v649_v8 = vld [vmem:[#allocation8 + $0xd0] sm:$0xff]  ;;  %702 = vmatpush1.msra.mxu0 %v651_v6  ;;  %v683_v51 = vld [vmem:[#allocation8 + $0x1e0] sm:$0xff] }
  0xbd   : > { %885 = vmatpush2.msra.mxu1 %v826_v9  ;;  %v648_v9 = vld [vmem:[#allocation8 + $0xc8] sm:$0xff]  ;;  %703 = vmatprep.subr.mxu0 %v650_v7  ;;  %v679_v55 = vld [vmem:[#allocation8 + $0x1c0] sm:$0xff]  ;;  %v666_v7 = vld [vmem:[#allocation8 + $0x158] sm:$0xff] }
  0xbe   : > { %886 = vmatprep.subr.mxu1 %v825_v10  ;;  %v647_v10 = vld [vmem:[#allocation8 + $0xc0] sm:$0xff]  ;;  %704 = vmatpush1.msra.mxu0 %v649_v8 }
  0xbf   : > { %887 = vmatpush2.msra.mxu1 %v824_v11  ;;  %v646_v11 = vld [vmem:[#allocation8 + $0xb8] sm:$0xff]  ;;  %705 = vmatprep.subr.mxu0 %v648_v9  ;;  %v675_v59 = vld [vmem:[#allocation8 + $0x1a0] sm:$0xff]  ;;  %v665_v9 = vld [vmem:[#allocation8 + $0x150] sm:$0xff] }
  0xc0   : > { %888 = vmatprep.subr.mxu1 %v823_v12  ;;  %v645_v12 = vld [vmem:[#allocation8 + $0xb0] sm:$0xff]  ;;  %706 = vmatpush1.msra.mxu0 %v647_v10  ;;  %v671_v63 = vld [vmem:[#allocation8 + $0x180] sm:$0xff] }
  0xc1   : > { %889 = vmatpush2.msra.mxu1 %v822_v13  ;;  %v644_v13 = vld [vmem:[#allocation8 + $0xa8] sm:$0xff]  ;;  %707 = vmatprep.subr.mxu0 %v646_v11  ;;  %v667_v5 = vld [vmem:[#allocation8 + $0x160] sm:$0xff] }
  0xc2   : > { %890 = vmatprep.subr.mxu1 %v821_v14  ;;  %v643_v14 = vld [vmem:[#allocation8 + $0xa0] sm:$0xff]  ;;  %708 = vmatpush1.msra.mxu0 %v645_v12  ;;  %v664_v11 = vld [vmem:[#allocation8 + $0x148] sm:$0xff] }
  0xc3   : > { %891 = vmatpush2.msra.mxu1 %v820_v15  ;;  %709 = vmatprep.subr.mxu0 %v644_v13  ;;  %v641_v15 = vld [vmem:[#allocation8 + $0x90] sm:$0xff]  ;;  %v663_v13 = vld [vmem:[#allocation8 + $0x140] sm:$0xff] }
  0xc4   : > { %892 = vmatprep.subr.mxu1 %v819_v16  ;;  %710 = vmatpush1.msra.mxu0 %v643_v14  ;;  %v640_v16 = vld [vmem:[#allocation8 + $0x88] sm:$0xff] }
  0xc5   : > { %893 = vmatpush2.msra.mxu1 %v818_v17  ;;  %711 = vmatprep.subr.mxu0 %v642_v33  ;;  %v639_v17 = vld [vmem:[#allocation8 + $0x80] sm:$0xff]  ;;  %v662_v33 = vld [vmem:[#allocation8 + $0x138] sm:$0xff] }
  0xc6   : > { %894 = vmatprep.subr.mxu1 %v817_v18  ;;  %712 = vmatpush1.msra.mxu0 %v641_v15  ;;  %v457_v18 = vlaneseq }
  0xc7   : > { %895 = vmatpush2.msra.mxu1 %v816_v19  ;;  %713 = vmatprep.subr.mxu0 %v640_v16  ;;  %v661_v16 = vld [vmem:[#allocation8 + $0x130] sm:$0xff] }
  0xc8   : > { %896 = vmatprep.subr.mxu1 %v815_v20  ;;  %714 = vmatpush1.msra.mxu0 %v639_v17  ;;  %v1722_v19 = vshrl.u32 %v457_v18, 7  ;;  %v660_v17 = vld [vmem:[#allocation8 + $0x128] sm:$0xff] }
  0xc9   : > { %897 = vmatpush2.msra.mxu1 %v814_v21  ;;  %v1725_v21 = vld [vmem:[#allocation7] sm:$0xf] }
  0xca   : > { %898 = vmatprep.subr.mxu1 %v813_v22  ;;  %v467_v20 = vsub.s32 2, %v1722_v19  ;;  %v471_v22 = vsub.s32 3, %v1722_v19  ;;  %v1731_v0 = vsub.s32 1, %v1722_v19  ;;  %v459_v8 = vsub.s32 0, %v1722_v19  ;;  %v659_v19 = vld [vmem:[#allocation8 + $0x120] sm:$0xff] }
  0xcb   : > { %899 = vmatpush2.msra.mxu1 %v812_v23 }
  0xcc   : > { %900 = vmatprep.subr.mxu1 %v811_v24  ;;  %v468_v23 = vrot.slane %v1725_v21, %v467_v20  ;;  %v472_v24 = vrot.slane %v1725_v21, %v471_v22  ;;  %v464_v4 = vrot.slane %v1725_v21, %v1731_v0  ;;  %v460_v14 = vrot.slane %v1725_v21, %v459_v8  ;;  %v658_v20 = vld [vmem:[#allocation8 + $0x118] sm:$0xff]  ;;  %v657_v22 = vld [vmem:[#allocation8 + $0x110] sm:$0xff]  ;;  %v655_v21 = vld [vmem:[#allocation8 + $0x100] sm:$0xff] }
  0xcd   : > { %901 = vmatpush2.msra.mxu1 %v810_v25 }
  0xce   : > { %902 = vmatprep.subr.mxu1 %v809_v26 }
  0xcf   : > { %903 = vmatpush2.msra.mxu1 %v808_v27 }
  0xd0   : > { %904 = vmatprep.subr.mxu1 %v807_v28 }
  0xd1   : > { %905 = vmatpush2.msra.mxu1 %v806_v29 }
  0xd2   : > { %906 = vmatprep.subr.mxu1 %v805_v30 }
  0xd3   : > { %907 = vmatpush2.msra.mxu1 %v804_v31  ;;  %v638_v31 = vld [vmem:[#allocation8 + $0x78] sm:$0xff] }
  0xd4   : > { %908 = vmatprep.subr.mxu1 %v803_v32  ;;  %v637_v32 = vld [vmem:[#allocation8 + $0x70] sm:$0xff]  ;;  %715 = vmatprep.subr.mxu0 %v638_v31 }
  0xd5   : > { %909 = vmatpush2.msra.mxu1 %v802_v34  ;;  %716 = vmatpush1.msra.mxu0 %v637_v32  ;;  %v636_v34 = vld [vmem:[#allocation8 + $0x68] sm:$0xff] }
  0xd6   : > { %717 = vmatprep.subr.mxu0 %v636_v34  ;;  %v687_v32 = vld [vmem:[%s1862_s4] sm:$0x3] }
  0xd7   : > { %718 = vmatpush1.msra.mxu0 %v635_v35  ;;  %v692_v34 = vrot.slane %v687_v32, %v459_v8 }
  0xd8   : > { %719 = vmatprep.subr.mxu0 %v634_v36  ;;  %v696_v36 = vrot.slane %v687_v32, %v1731_v0 }
  0xd9   : > { %720 = vmatpush1.msra.mxu0 %v633_v37 }
  0xda   : > { %721 = vmatprep.subr.mxu0 %v632_v38 }
  0xdb   : > { %722 = vmatpush1.msra.mxu0 %v631_v39 }
  0xdc   : > { %723 = vmatprep.subr.mxu0 %v630_v40 }
  0xdd   : > { %724 = vmatpush1.msra.mxu0 %v629_v41 }
  0xde   : > { %725 = vmatprep.subr.mxu0 %v628_v42 }
  0xdf   : > { %726 = vmatpush1.msra.mxu0 %v627_v43 }
  0xe0   : > { %727 = vmatprep.subr.mxu0 %v626_v44 }
  0xe1   : > { %728 = vmatpush1.msra.mxu0 %v625_v45 }
  0xe2   : > { %729 = vmatprep.subr.mxu0 %v624_v46 }
  0xe3   : > { %730 = vmatpush1.msra.mxu0 %v623_v47 }
  0xe4   : > { %731 = vmatprep.subr.mxu0 %v686_v48 }
  0xe5   : > { %732 = vmatpush2.msra.mxu0 %v685_v49 }
  0xe6   : > { %733 = vmatprep.subr.mxu0 %v684_v50 }
  0xe7   : > { %734 = vmatpush2.msra.mxu0 %v683_v51 }
  0xe8   : > { %735 = vmatprep.subr.mxu0 %v682_v52 }
  0xe9   : > { %736 = vmatpush2.msra.mxu0 %v681_v53 }
  0xea   : > { %737 = vmatprep.subr.mxu0 %v680_v54 }
  0xeb   : > { %738 = vmatpush2.msra.mxu0 %v679_v55 }
  0xec   : > { %739 = vmatprep.subr.mxu0 %v678_v56 }
  0xed   : > { %740 = vmatpush2.msra.mxu0 %v677_v57 }
  0xee   : > { %741 = vmatprep.subr.mxu0 %v676_v58 }
  0xef   : > { %742 = vmatpush2.msra.mxu0 %v675_v59 }
  0xf0   : > { %743 = vmatprep.subr.mxu0 %v674_v60 }
  0xf1   : > { %744 = vmatpush2.msra.mxu0 %v673_v61 }
  0xf2   : > { %745 = vmatprep.subr.mxu0 %v672_v62 }
  0xf3   : > { %746 = vmatpush2.msra.mxu0 %v671_v63 }
  0xf4   : > { %747 = vmatprep.subr.mxu0 %v670_v1 }
  0xf5   : > { %748 = vmatpush2.msra.mxu0 %v669_v2 }
  0xf6   : > { %749 = vmatprep.subr.mxu0 %v668_v3 }
  0xf7   : > { %750 = vmatpush2.msra.mxu0 %v667_v5 }
  0xf8   : > { %751 = vmatprep.subr.mxu0 %v666_v7 }
  0xf9   : > { %752 = vmatpush2.msra.mxu0 %v665_v9 }
  0xfa   : > { %753 = vmatprep.subr.mxu0 %v664_v11 }
  0xfb   : > { %754 = vmatpush2.msra.mxu0 %v663_v13 }
  0xfc   : > { %755 = vmatprep.subr.mxu0 %v662_v33 }
  0xfd   : > { %756 = vmatpush2.msra.mxu0 %v661_v16 }
  0xfe   : > { %757 = vmatprep.subr.mxu0 %v660_v17 }
  0xff   : > { %758 = vmatpush2.msra.mxu0 %v659_v19 }
 0x100   : > { %759 = vmatprep.subr.mxu0 %v658_v20 }
 0x101   : > { %760 = vmatpush2.msra.mxu0 %v657_v22 }
 0x156   : > { %v614_v25 = vpop.f32.mrf.mxu1 }
 0x157   : > { %v615_v26 = vadd.f32 %v614_v25, %v468_v23  ;;  %v656_v23 = vld [vmem:[#allocation8 + $0x108] sm:$0xff] }
 0x158   : > { %v616_v27 = vpop.f32.mrf.mxu1  ;;  %761 = vmatprep.subr.mxu0 %v656_v23  ;;  %v834_v25 = vld [vmem:[%s1864_s6] sm:$0x3] }
 0x159   : > { %v617_v28 = vadd.f32 %v616_v27, %v472_v24  ;;  %v621_v30 = vmax.f32 %v615_v26, 0.0  ;;  %762 = vmatpush2.msra.mxu0 %v655_v21  ;;  %v839_v26 = vrot.slane %v834_v25, %v459_v8 }
 0x15b   : > { %v622_v29 = vmax.f32 %v617_v28, 0.0 }
 0x15d   : > { %910 = vmatprep.mubr.f32.mxu1 %v622_v29  ;;  %v843_v29 = vrot.slane %v834_v25, %v1731_v0 }
 0x15e   : > { %911 = vmatmul.mubr.f32.vlgmr.msra.gmra.mxu1 %v621_v30 }
 0x178   : > { %v543_v6 = vpop.f32.mrf.mxu0 }
 0x179   : > { %v544_v18 = vadd.f32 %v543_v6, %v460_v14 }
 0x17a   : > { %v545_v10 = vpop.f32.mrf.mxu0 }
 0x17b   : > { %v546_v12 = vadd.f32 %v545_v10, %v464_v4  ;;  %v619_v24 = vmax.f32 %v544_v18, 0.0 }
 0x17d   : > { %v620_v15 = vmax.f32 %v546_v12, 0.0 }
 0x17f   : > { %763 = vmatprep.mubr.f32.mxu0 %v620_v15 }
 0x180   : > { %764 = vmatmul.mubr.f32.vlgmr.msra.gmra.mxu0 %v619_v24 }
 0x21e   : > { %v912_v27 = vpop.f32.mrf.mxu1 }
 0x21f   : > { %v913_v28 = vadd.f32 %v912_v27, %v839_v26 }
 0x220   : > { %v914_v30 = vpop.f32.mrf.mxu1 }
 0x221   : > { %919 = vxpose.xlu0.b32.start.end [1/1] (short) %v913_v28, 128  ;;  %v915_v31 = vadd.f32 %v914_v30, %v843_v29 }
 0x240   : > { %v765_v35 = vpop.f32.mrf.mxu0 }
 0x241   : > { %v766_v37 = vadd.f32 %v765_v35, %v692_v34 }
 0x242   : > { %v767_v38 = vpop.f32.mrf.mxu0 }
 0x243   : > { %v768_v39 = vadd.f32 %v767_v38, %v696_v36  ;;  %917 = vst [vmem:[%s377_s23] sm:$0xff] %v766_v37 }
 0x245   : > { %918 = vst [vmem:[%s377_s23 + $0x8] sm:$0xff] %v768_v39 }
 0x25e   : > { %951 = vxpose.xlu0.b32.start.end [1/1] (short) %v915_v31, 128 }
 0x25f   : > { %1434 = shalt.err (!%p1431_p13)
}
 0x260   : > { %s1435_s22 = scalar_lea.hbm %s1752_s14, 256  ;;  %s1439_s19 = scalar_lea.hbm %s1865_s7, 512 }
 0x261   : > { %p1436_p1 = scmp.ne.s32.totalorder %s1752_s14, %s1435_s22  ;;  %p1440_p6 = scmp.lt.s32.totalorder %s1752_s14, %s1865_s7 }
 0x262   : > { %p1441_p2 = scmp.lt.s32.totalorder %s1439_s19, %s1435_s22 }
 0x263   : > { %p1437_p3 = pnand %p1436_p1, %p1890_p10 }
 0x264   : > { %p1442_p8 = por %p1441_p2, %p1440_p6 }
 0x265   : > { %p1438_p4 = pneg %p1437_p3 }
 0x267   : > { %p1443_p7 = pnand %p1442_p8, %p1438_p4 }
 0x269   : > { %1446 = shalt.err (!%p1443_p7)
}
 0x26a   : > { %1215 = dma.vmem_to_hbm [thread:$0]  (%p1890_p10), %s1037_s21, 256, %s1752_s14, %s1017_s12  }
 0x29d   : > { %v935_v40 = vpop.trf.xlu0 }
 0x29e   : > { %984 = vst.msk [vmem:[%s1757_s3] sm:$0xff] %vm983_vm0, %v935_v40 }
 0x2a1   : > { %v936_v41 = vpop.trf.xlu0 }
 0x2a2   : > { %985 = vst.msk [vmem:[%s1757_s3 + $0x8] sm:$0xff] %vm983_vm0, %v936_v41 }
 0x2a5   : > { %v937_v42 = vpop.trf.xlu0 }
 0x2a6   : > { %986 = vst.msk [vmem:[%s1757_s3 + $0x10] sm:$0xff] %vm983_vm0, %v937_v42 }
 0x2a9   : > { %v938_v43 = vpop.trf.xlu0 }
 0x2aa   : > { %987 = vst.msk [vmem:[%s1757_s3 + $0x18] sm:$0xff] %vm983_vm0, %v938_v43 }
 0x2ad   : > { %v939_v44 = vpop.trf.xlu0 }
 0x2ae   : > { %988 = vst.msk [vmem:[%s1757_s3 + $0x20] sm:$0xff] %vm983_vm0, %v939_v44 }
 0x2b1   : > { %v940_v45 = vpop.trf.xlu0 }
 0x2b2   : > { %989 = vst.msk [vmem:[%s1757_s3 + $0x28] sm:$0xff] %vm983_vm0, %v940_v45 }
 0x2b5   : > { %v941_v46 = vpop.trf.xlu0 }
 0x2b6   : > { %990 = vst.msk [vmem:[%s1757_s3 + $0x30] sm:$0xff] %vm983_vm0, %v941_v46 }
 0x2b9   : > { %v942_v47 = vpop.trf.xlu0 }
 0x2ba   : > { %991 = vst.msk [vmem:[%s1757_s3 + $0x38] sm:$0xff] %vm983_vm0, %v942_v47 }
 0x2bd   : > { %v943_v48 = vpop.trf.xlu0 }
 0x2be   : > { %992 = vst.msk [vmem:[%s1757_s3 + $0x40] sm:$0xff] %vm983_vm0, %v943_v48 }
 0x2c1   : > { %v944_v49 = vpop.trf.xlu0 }
 0x2c2   : > { %993 = vst.msk [vmem:[%s1757_s3 + $0x48] sm:$0xff] %vm983_vm0, %v944_v49 }
 0x2c5   : > { %v945_v50 = vpop.trf.xlu0 }
 0x2c6   : > { %994 = vst.msk [vmem:[%s1757_s3 + $0x50] sm:$0xff] %vm983_vm0, %v945_v50 }
 0x2c9   : > { %v946_v51 = vpop.trf.xlu0 }
 0x2ca   : > { %995 = vst.msk [vmem:[%s1757_s3 + $0x58] sm:$0xff] %vm983_vm0, %v946_v51 }
 0x2cd   : > { %v947_v52 = vpop.trf.xlu0 }
 0x2ce   : > { %996 = vst.msk [vmem:[%s1757_s3 + $0x60] sm:$0xff] %vm983_vm0, %v947_v52 }
 0x2d1   : > { %v948_v53 = vpop.trf.xlu0 }
 0x2d2   : > { %997 = vst.msk [vmem:[%s1757_s3 + $0x68] sm:$0xff] %vm983_vm0, %v948_v53 }
 0x2d5   : > { %v949_v54 = vpop.trf.xlu0 }
 0x2d6   : > { %998 = vst.msk [vmem:[%s1757_s3 + $0x70] sm:$0xff] %vm983_vm0, %v949_v54 }
 0x2d9   : > { %v950_v55 = vpop.trf.xlu0 }
 0x2da   : > { %999 = vst.msk [vmem:[%s1757_s3 + $0x78] sm:$0xff] %vm983_vm0, %v950_v55 }
 0x2dd   : > { %v967_v56 = vpop.trf.xlu0 }
 0x2de   : > { %1000 = vst.msk [vmem:[%s1757_s3 + $0x80] sm:$0xff] %vm983_vm0, %v967_v56 }
 0x2e1   : > { %v968_v57 = vpop.trf.xlu0 }
 0x2e2   : > { %1001 = vst.msk [vmem:[%s1757_s3 + $0x88] sm:$0xff] %vm983_vm0, %v968_v57 }
 0x2e5   : > { %v969_v58 = vpop.trf.xlu0 }
 0x2e6   : > { %1002 = vst.msk [vmem:[%s1757_s3 + $0x90] sm:$0xff] %vm983_vm0, %v969_v58 }
 0x2e9   : > { %v970_v59 = vpop.trf.xlu0 }
 0x2ea   : > { %1003 = vst.msk [vmem:[%s1757_s3 + $0x98] sm:$0xff] %vm983_vm0, %v970_v59 }
 0x2ed   : > { %v971_v60 = vpop.trf.xlu0 }
 0x2ee   : > { %1004 = vst.msk [vmem:[%s1757_s3 + $0xa0] sm:$0xff] %vm983_vm0, %v971_v60 }
 0x2f1   : > { %v972_v61 = vpop.trf.xlu0 }
 0x2f2   : > { %1005 = vst.msk [vmem:[%s1757_s3 + $0xa8] sm:$0xff] %vm983_vm0, %v972_v61 }
 0x2f5   : > { %v973_v62 = vpop.trf.xlu0 }
 0x2f6   : > { %1006 = vst.msk [vmem:[%s1757_s3 + $0xb0] sm:$0xff] %vm983_vm0, %v973_v62 }
 0x2f9   : > { %v974_v63 = vpop.trf.xlu0 }
 0x2fa   : > { %1007 = vst.msk [vmem:[%s1757_s3 + $0xb8] sm:$0xff] %vm983_vm0, %v974_v63 }
 0x2fd   : > { %v975_v0 = vpop.trf.xlu0 }
 0x2fe   : > { %1008 = vst.msk [vmem:[%s1757_s3 + $0xc0] sm:$0xff] %vm983_vm0, %v975_v0 }
 0x301   : > { %v976_v1 = vpop.trf.xlu0 }
 0x302   : > { %1009 = vst.msk [vmem:[%s1757_s3 + $0xc8] sm:$0xff] %vm983_vm0, %v976_v1 }
 0x305   : > { %v977_v2 = vpop.trf.xlu0 }
 0x306   : > { %1010 = vst.msk [vmem:[%s1757_s3 + $0xd0] sm:$0xff] %vm983_vm0, %v977_v2 }
 0x309   : > { %v978_v3 = vpop.trf.xlu0 }
 0x30a   : > { %1011 = vst.msk [vmem:[%s1757_s3 + $0xd8] sm:$0xff] %vm983_vm0, %v978_v3 }
 0x30d   : > { %v979_v4 = vpop.trf.xlu0 }
 0x30e   : > { %1012 = vst.msk [vmem:[%s1757_s3 + $0xe0] sm:$0xff] %vm983_vm0, %v979_v4 }
 0x311   : > { %v980_v5 = vpop.trf.xlu0 }
 0x312   : > { %1013 = vst.msk [vmem:[%s1757_s3 + $0xe8] sm:$0xff] %vm983_vm0, %v980_v5 }
 0x315   : > { %v981_v6 = vpop.trf.xlu0 }
 0x316   : > { %1014 = vst.msk [vmem:[%s1757_s3 + $0xf0] sm:$0xff] %vm983_vm0, %v981_v6 }
 0x319   : > { %v982_v7 = vpop.trf.xlu0 }
 0x31a   : > { %1015 = vst.msk [vmem:[%s1757_s3 + $0xf8] sm:$0xff] %vm983_vm0, %v982_v7 }
 0x31b PF: > { %s1051_s10 = sand.u32 1, %s1481_s27   ;;  %p1891_p10 = scmp.ne.s32.totalorder %s1882_s13, 0 }
 0x31c   : > { %p1892_p0 = scmp.ge.s32.totalorder %s1493_s30, 2  ;;  %s1052_s21 = scalar_lea.sflag [#allocation4], %s1051_s10 }
 0x31e   : > { %p1235_p12 = pnand %p1892_p0, %p1891_p10 }
 0x320   : > { %p1236_p5 = pneg %p1235_p12 }
 0x322   : > { %1476 = dma.done.wait (%p1236_p5), %s1052_s21, 256  }
 0x323   : > { %1478 = vsyncadd (%p1236_p5), %s1052_s21, 4294967040  ;;  %p24_p9 = scmp.ge.s32.totalorder %s1636_s15, 4   ;;  %s1893_s27 = smov %s1485_s28 }
 0x324   : > { %s1894_s28 = smov %s1489_s29  ;;  %s1895_s29 = smov %s1647_s26 }
 0x325   : > { %s1896_s30 = smov %s1636_s15  ;;  %26 = sbr.rel (!%p24_p9) target bundleno = 11 (0xb), region = 121 }
 0x32a   :  { %1065 = vsyncpa [#allocation3], 1 }
 0x32b   :  { %1067 = vsyncpa [#allocation3 + $0x1], 1 }
 0x32c   :  { %1068 = vsyncpa [#allocation6], 1 }
 0x32d   :  { %1069 = vsyncpa [#allocation9], 1 }
 0x32e   :  { %1070 = vsyncpa [#allocation4], 1 }
 0x32f   :  { %1072 = vsyncpa [#allocation4 + $0x1], 1 }

</bundles_post_ra>
